<compile_context>
chip_gen: v7x
topology: tpu7x:2x2x1
jax: 0.10.0
libtpu: 0.0.40
codegen_flags: <defaults>
</compile_context>

<pallas_src>
import math

import jax
import jax.numpy as jnp
from jax import lax
from jax.experimental import pallas as pl
from jax.experimental.pallas import tpu as pltpu


def _pick_tile(s, pref):
    for t in (pref, 512, 256, 128, 64, 32, 16, 8):
        if t <= s and s % t == 0 and t % 8 == 0:
            return t
    return s


# --------------------------- kernel 1: QKV projection ---------------------------

def _qkv_proj_kernel(x_ref, wq_ref, wk_ref, wv_ref, q_ref, k_ref, v_ref):
    x = x_ref[0]                                    # (ts, D_in) bf16
    q_ref[0, 0] = jnp.dot(x, wq_ref[0],
                          preferred_element_type=jnp.float32).astype(q_ref.dtype)
    k_ref[0, 0] = jnp.dot(x, wk_ref[0],
                          preferred_element_type=jnp.float32).astype(k_ref.dtype)
    v_ref[0, 0] = jnp.dot(x, wv_ref[0],
                          preferred_element_type=jnp.float32).astype(v_ref.dtype)


# ---------------- kernel 2: flash attention + fused output projection -----------

def _attn_kernel(q_ref, k_ref, v_ref, wo_ref, o_ref, m_sc, l_sc, acc_sc, out_sc):
    h = pl.program_id(2)
    ki = pl.program_id(3)
    nh = pl.num_programs(2)
    nk = pl.num_programs(3)

    @pl.when(jnp.logical_and(h == 0, ki == 0))
    def _():
        out_sc[...] = jnp.zeros_like(out_sc)

    @pl.when(ki == 0)
    def _():
        m_sc[...] = jnp.full_like(m_sc, -jnp.inf)
        l_sc[...] = jnp.zeros_like(l_sc)
        acc_sc[...] = jnp.zeros_like(acc_sc)

    q = q_ref[0, 0]                                  # (tq, hd) bf16, pre-scaled
    k = k_ref[0, 0]                                  # (tk, hd) bf16
    v = v_ref[0, 0]                                  # (tk, hd) bf16

    # logits = q @ k^T via dot_general (no materialized transpose).
    s = lax.dot_general(q, k, (((1,), (1,)), ((), ())),
                        preferred_element_type=jnp.float32)   # (tq, tk) f32

    m_prev = m_sc[...]
    m_new = jnp.maximum(m_prev, jnp.max(s, axis=-1, keepdims=True))
    alpha = jnp.exp(m_prev - m_new)
    p = jnp.exp(s - m_new)                                    # f32 softmax math
    l_sc[...] = alpha * l_sc[...] + jnp.sum(p, axis=-1, keepdims=True)
    acc_sc[...] = alpha * acc_sc[...] + jnp.dot(
        p.astype(jnp.bfloat16), v, preferred_element_type=jnp.float32)
    m_sc[...] = m_new

    @pl.when(ki == nk - 1)
    def _():
        inv_l = pl.reciprocal(l_sc[...], approx=True)          # EUP slot
        ctx = (acc_sc[...] * inv_l).astype(jnp.bfloat16)       # (tq, hd)
        # concat-heads @ W_o  ==  sum over heads of head_ctx @ W_o[head rows]
        out_sc[...] += jnp.dot(ctx, wo_ref[0],
                               preferred_element_type=jnp.float32)

    @pl.when(jnp.logical_and(h == nh - 1, ki == nk - 1))
    def _():
        o_ref[0] = out_sc[...].astype(o_ref.dtype)


def multihead_attention(x, w_qkv, w_o, n_heads, *, ts=None, tq=None, tk=None):
    """x: (B, S, D_in); w_qkv: (3*E, D_in); w_o: (D_in, E) (PyTorch Linear layout)."""
    B, S, D_in = x.shape
    E = w_qkv.shape[0] // 3
    H = n_heads
    hd = E // H

    ts = ts or _pick_tile(S, 512)
    tq = tq or _pick_tile(S, 512)
    tk = tk or _pick_tile(S, 512)

    # ---- weight repacking (once, outside the hot loop) ----
    # PyTorch: row (h*3*hd + kind*hd + d) of w_qkv -> (head h, kind, dim d) after
    # the module's reshape.  Split into per-head per-kind slabs, pre-transposed to
    # (D_in, hd); fold the 1/sqrt(hd) scale into the Q weight (in f32).
    w3 = w_qkv.reshape(H, 3, hd, D_in)
    scale = 1.0 / math.sqrt(hd)
    wq_h = (jnp.swapaxes(w3[:, 0], 1, 2) * scale).astype(jnp.bfloat16)   # (H, D_in, hd)
    wk_h = jnp.swapaxes(w3[:, 1], 1, 2).astype(jnp.bfloat16)             # (H, D_in, hd)
    wv_h = jnp.swapaxes(w3[:, 2], 1, 2).astype(jnp.bfloat16)             # (H, D_in, hd)
    # o_proj: out = values @ w_o.T ; head-h rows of w_o.T are w_o[:, h*hd:(h+1)*hd].T
    wo_h = jnp.transpose(w_o.reshape(D_in, H, hd), (1, 2, 0)).astype(jnp.bfloat16)  # (H, hd, D_in)

    x_bf = x.astype(jnp.bfloat16)

    # ---- kernel 1: per-head Q/K/V projection, output layout (B, H, S, hd) ----
    qkv_shapes = tuple(jax.ShapeDtypeStruct((B, H, S, hd), jnp.bfloat16)
                       for _ in range(3))
    q, k, v = pl.pallas_call(
        _qkv_proj_kernel,
        out_shape=qkv_shapes,
        grid_spec=pltpu.PrefetchScalarGridSpec(
            num_scalar_prefetch=0,
            grid=(B, S // ts, H),
            in_specs=[
                pl.BlockSpec((1, ts, D_in), lambda b, si, h: (b, si, 0)),
                # constant block index across (b, si): no re-DMA of the weights
                pl.BlockSpec((1, D_in, hd), lambda b, si, h: (h, 0, 0)),
                pl.BlockSpec((1, D_in, hd), lambda b, si, h: (h, 0, 0)),
                pl.BlockSpec((1, D_in, hd), lambda b, si, h: (h, 0, 0)),
            ],
            out_specs=[
                pl.BlockSpec((1, 1, ts, hd), lambda b, si, h: (b, h, si, 0)),
                pl.BlockSpec((1, 1, ts, hd), lambda b, si, h: (b, h, si, 0)),
                pl.BlockSpec((1, 1, ts, hd), lambda b, si, h: (b, h, si, 0)),
            ],
        ),
        compiler_params=pltpu.CompilerParams(
            dimension_semantics=("parallel", "parallel", "parallel")),
    )(x_bf, wq_h, wk_h, wv_h)

    # ---- kernel 2: flash attention over KV tiles + fused output projection ----
    out = pl.pallas_call(
        _attn_kernel,
        out_shape=jax.ShapeDtypeStruct((B, S, D_in), x.dtype),
        grid_spec=pltpu.PrefetchScalarGridSpec(
            num_scalar_prefetch=0,
            grid=(B, S // tq, H, S // tk),
            in_specs=[
                pl.BlockSpec((1, 1, tq, hd), lambda b, qi, h, ki: (b, h, qi, 0)),
                pl.BlockSpec((1, 1, tk, hd), lambda b, qi, h, ki: (b, h, ki, 0)),
                pl.BlockSpec((1, 1, tk, hd), lambda b, qi, h, ki: (b, h, ki, 0)),
                pl.BlockSpec((1, hd, D_in), lambda b, qi, h, ki: (h, 0, 0)),
            ],
            out_specs=pl.BlockSpec((1, tq, D_in), lambda b, qi, h, ki: (b, qi, 0)),
            scratch_shapes=[
                pltpu.VMEM((tq, 1), jnp.float32),     # running row max
                pltpu.VMEM((tq, 1), jnp.float32),     # running softmax denom
                pltpu.VMEM((tq, hd), jnp.float32),    # per-head context accumulator
                pltpu.VMEM((tq, D_in), jnp.float32),  # output-projection accumulator
            ],
        ),
        compiler_params=pltpu.CompilerParams(
            dimension_semantics=("parallel", "parallel", "arbitrary", "arbitrary")),
    )(q, k, v, wo_h)

    return out


def _reference(x, w_qkv, w_o, n_heads):
    """Pure-JAX f32 reference mirroring the PyTorch forward."""
    B, S, D_in = x.shape
    E = w_qkv.shape[0] // 3
    hd = E // n_heads
    qkv = x @ w_qkv.T                                                 # (B, S, 3E)
    qkv = qkv.reshape(B, S, n_heads, 3 * hd).transpose(0, 2, 1, 3)    # (B, H, S, 3hd)
    q, k, v = qkv[..., :hd], qkv[..., hd:2 * hd], qkv[..., 2 * hd:]
    logits = jnp.einsum("bhqd,bhkd->bhqk", q, k) / math.sqrt(hd)
    attn = jax.nn.softmax(logits, axis=-1)
    vals = jnp.einsum("bhqk,bhkd->bhqd", attn, v)                     # (B, H, S, hd)
    vals = vals.transpose(0, 2, 1, 3).reshape(B, S, E)
    return vals @ w_o.T


if __name__ == "__main__":
    # Small shapes consistent with the module's forward.
    batch, seq, input_dim = 2, 8, 16
    embed_dim, n_heads = 32, 4

    key = jax.random.PRNGKey(0)
    kx, kq, ko = jax.random.split(key, 3)

    x = jax.random.normal(kx, (batch, seq, input_dim), dtype=jnp.float32)

    # xavier_normal_ for qkv_proj.weight  (shape (3*embed_dim, input_dim))
    fan_in, fan_out = input_dim, 3 * embed_dim
    std = math.sqrt(2.0 / (fan_in + fan_out))
    w_qkv = std * jax.random.normal(kq, (3 * embed_dim, input_dim), dtype=jnp.float32)

    # xavier_uniform_ for o_proj.weight  (shape (input_dim, embed_dim))
    fan_in_o, fan_out_o = embed_dim, input_dim
    bound = math.sqrt(6.0 / (fan_in_o + fan_out_o))
    w_o = jax.random.uniform(
        ko, (input_dim, embed_dim), dtype=jnp.float32, minval=-bound, maxval=bound
    )

    out = multihead_attention(x, w_qkv, w_o, n_heads)
    out = jax.block_until_ready(out)

    ref = _reference(x, w_qkv, w_o, n_heads)
    assert out.shape == (batch, seq, input_dim)
    # bf16 MXU operands (f32 accumulation) vs the f32 reference => loose tolerance.
    assert jnp.allclose(out, ref, atol=3e-2, rtol=3e-2), "mismatch vs reference"

    print("KERNEL_OK")
</pallas_src>

<mosaic_0001>
module attributes {stable_mosaic.version = 11 : i64} {
  func.func @_qkv_proj_kernel(%arg0: i32, %arg1: i32, %arg2: i32, %arg3: memref<1x8x16xbf16, #tpu.memory_space<vmem>>, %arg4: memref<1x16x8xbf16, #tpu.memory_space<vmem>>, %arg5: memref<1x16x8xbf16, #tpu.memory_space<vmem>>, %arg6: memref<1x16x8xbf16, #tpu.memory_space<vmem>>, %arg7: memref<1x1x8x8xbf16, #tpu.memory_space<vmem>>, %arg8: memref<1x1x8x8xbf16, #tpu.memory_space<vmem>>, %arg9: memref<1x1x8x8xbf16, #tpu.memory_space<vmem>>) attributes {dimension_semantics = [#tpu.dimension_semantics<parallel>, #tpu.dimension_semantics<parallel>, #tpu.dimension_semantics<parallel>], iteration_bounds = array<i64: 2, 1, 4>, scalar_prefetch = 0 : i64, scratch_operands = 0 : i64, tpu.core_type = #tpu.core_type<tc>, window_params = [{transform_indices = @transform_0, window_bounds = array<i64: 1, 8, 16>}, {transform_indices = @transform_1, window_bounds = array<i64: 1, 16, 8>}, {transform_indices = @transform_2, window_bounds = array<i64: 1, 16, 8>}, {transform_indices = @transform_3, window_bounds = array<i64: 1, 16, 8>}, {transform_indices = @transform_4, window_bounds = array<i64: 1, 1, 8, 8>}, {transform_indices = @transform_5, window_bounds = array<i64: 1, 1, 8, 8>}, {transform_indices = @transform_6, window_bounds = array<i64: 1, 1, 8, 8>}]} {
    %c0 = arith.constant 0 : index
    %c0_0 = arith.constant 0 : index
    %c0_1 = arith.constant 0 : index
    %0 = vector.load %arg3[%c0, %c0_0, %c0_1] : memref<1x8x16xbf16, #tpu.memory_space<vmem>>, vector<1x8x16xbf16>
    %1 = vector.shape_cast %0 : vector<1x8x16xbf16> to vector<8x16xbf16>
    %c0_2 = arith.constant 0 : index
    %c0_3 = arith.constant 0 : index
    %c0_4 = arith.constant 0 : index
    %2 = vector.load %arg4[%c0_2, %c0_3, %c0_4] : memref<1x16x8xbf16, #tpu.memory_space<vmem>>, vector<1x16x8xbf16>
    %3 = vector.shape_cast %2 : vector<1x16x8xbf16> to vector<16x8xbf16>
    %cst = arith.constant dense<0.000000e+00> : vector<8x8xf32>
    %4 = tpu.matmul %1, %3, %cst {dimension_numbers = #tpu.dot_dimension_numbers<[1], [0], [0], [1], [0, 0, 1, 1], [], []>} : vector<8x16xbf16>, vector<16x8xbf16>, vector<8x8xf32> -> vector<8x8xf32>
    %5 = arith.truncf %4 : vector<8x8xf32> to vector<8x8xbf16>
    %c0_5 = arith.constant 0 : index
    %c0_6 = arith.constant 0 : index
    %c0_7 = arith.constant 0 : index
    %c0_8 = arith.constant 0 : index
    %6 = vector.load %arg7[%c0_5, %c0_6, %c0_7, %c0_8] : memref<1x1x8x8xbf16, #tpu.memory_space<vmem>>, vector<1x1x8x8xbf16>
    %7 = vector.shape_cast %6 : vector<1x1x8x8xbf16> to vector<8x8xbf16>
    %8 = vector.shape_cast %5 : vector<8x8xbf16> to vector<1x1x8x8xbf16>
    tpu.vector_store %arg7[%c0_5, %c0_6, %c0_7, %c0_8], %8 {strides = array<i32>} : memref<1x1x8x8xbf16, #tpu.memory_space<vmem>>, vector<1x1x8x8xbf16>,
    %c0_9 = arith.constant 0 : index
    %c0_10 = arith.constant 0 : index
    %c0_11 = arith.constant 0 : index
    %9 = vector.load %arg5[%c0_9, %c0_10, %c0_11] : memref<1x16x8xbf16, #tpu.memory_space<vmem>>, vector<1x16x8xbf16>
    %10 = vector.shape_cast %9 : vector<1x16x8xbf16> to vector<16x8xbf16>
    %cst_12 = arith.constant dense<0.000000e+00> : vector<8x8xf32>
    %11 = tpu.matmul %1, %10, %cst_12 {dimension_numbers = #tpu.dot_dimension_numbers<[1], [0], [0], [1], [0, 0, 1, 1], [], []>} : vector<8x16xbf16>, vector<16x8xbf16>, vector<8x8xf32> -> vector<8x8xf32>
    %12 = arith.truncf %11 : vector<8x8xf32> to vector<8x8xbf16>
    %c0_13 = arith.constant 0 : index
    %c0_14 = arith.constant 0 : index
    %c0_15 = arith.constant 0 : index
    %c0_16 = arith.constant 0 : index
    %13 = vector.load %arg8[%c0_13, %c0_14, %c0_15, %c0_16] : memref<1x1x8x8xbf16, #tpu.memory_space<vmem>>, vector<1x1x8x8xbf16>
    %14 = vector.shape_cast %13 : vector<1x1x8x8xbf16> to vector<8x8xbf16>
    %15 = vector.shape_cast %12 : vector<8x8xbf16> to vector<1x1x8x8xbf16>
    tpu.vector_store %arg8[%c0_13, %c0_14, %c0_15, %c0_16], %15 {strides = array<i32>} : memref<1x1x8x8xbf16, #tpu.memory_space<vmem>>, vector<1x1x8x8xbf16>,
    %c0_17 = arith.constant 0 : index
    %c0_18 = arith.constant 0 : index
    %c0_19 = arith.constant 0 : index
    %16 = vector.load %arg6[%c0_17, %c0_18, %c0_19] : memref<1x16x8xbf16, #tpu.memory_space<vmem>>, vector<1x16x8xbf16>
    %17 = vector.shape_cast %16 : vector<1x16x8xbf16> to vector<16x8xbf16>
    %cst_20 = arith.constant dense<0.000000e+00> : vector<8x8xf32>
    %18 = tpu.matmul %1, %17, %cst_20 {dimension_numbers = #tpu.dot_dimension_numbers<[1], [0], [0], [1], [0, 0, 1, 1], [], []>} : vector<8x16xbf16>, vector<16x8xbf16>, vector<8x8xf32> -> vector<8x8xf32>
    %19 = arith.truncf %18 : vector<8x8xf32> to vector<8x8xbf16>
    %c0_21 = arith.constant 0 : index
    %c0_22 = arith.constant 0 : index
    %c0_23 = arith.constant 0 : index
    %c0_24 = arith.constant 0 : index
    %20 = vector.load %arg9[%c0_21, %c0_22, %c0_23, %c0_24] : memref<1x1x8x8xbf16, #tpu.memory_space<vmem>>, vector<1x1x8x8xbf16>
    %21 = vector.shape_cast %20 : vector<1x1x8x8xbf16> to vector<8x8xbf16>
    %22 = vector.shape_cast %19 : vector<8x8xbf16> to vector<1x1x8x8xbf16>
    tpu.vector_store %arg9[%c0_21, %c0_22, %c0_23, %c0_24], %22 {strides = array<i32>} : memref<1x1x8x8xbf16, #tpu.memory_space<vmem>>, vector<1x1x8x8xbf16>,
    return
  }
  func.func @transform_0(%arg0: i32, %arg1: i32, %arg2: i32) -> (i32, i32, i32) {
    %c0_i32 = arith.constant 0 : i32
    %c0_i32_0 = arith.constant 0 : i32
    return %arg0, %arg1, %c0_i32 : i32, i32, i32
  }
  func.func @transform_1(%arg0: i32, %arg1: i32, %arg2: i32) -> (i32, i32, i32) {
    %c0_i32 = arith.constant 0 : i32
    %c0_i32_0 = arith.constant 0 : i32
    %c0_i32_1 = arith.constant 0 : i32
    return %arg2, %c0_i32, %c0_i32_0 : i32, i32, i32
  }
  func.func @transform_2(%arg0: i32, %arg1: i32, %arg2: i32) -> (i32, i32, i32) {
    %c0_i32 = arith.constant 0 : i32
    %c0_i32_0 = arith.constant 0 : i32
    %c0_i32_1 = arith.constant 0 : i32
    return %arg2, %c0_i32, %c0_i32_0 : i32, i32, i32
  }
  func.func @transform_3(%arg0: i32, %arg1: i32, %arg2: i32) -> (i32, i32, i32) {
    %c0_i32 = arith.constant 0 : i32
    %c0_i32_0 = arith.constant 0 : i32
    %c0_i32_1 = arith.constant 0 : i32
    return %arg2, %c0_i32, %c0_i32_0 : i32, i32, i32
  }
  func.func @transform_4(%arg0: i32, %arg1: i32, %arg2: i32) -> (i32, i32, i32, i32) {
    %c0_i32 = arith.constant 0 : i32
    %c0_i32_0 = arith.constant 0 : i32
    return %arg0, %arg2, %arg1, %c0_i32 : i32, i32, i32, i32
  }
  func.func @transform_5(%arg0: i32, %arg1: i32, %arg2: i32) -> (i32, i32, i32, i32) {
    %c0_i32 = arith.constant 0 : i32
    %c0_i32_0 = arith.constant 0 : i32
    return %arg0, %arg2, %arg1, %c0_i32 : i32, i32, i32, i32
  }
  func.func @transform_6(%arg0: i32, %arg1: i32, %arg2: i32) -> (i32, i32, i32, i32) {
    %c0_i32 = arith.constant 0 : i32
    %c0_i32_0 = arith.constant 0 : i32
    return %arg0, %arg2, %arg1, %c0_i32 : i32, i32, i32, i32
  }
}

</mosaic_0001>

<bundles_post_ra>
// kernel: tpu_custom_call.1
= control target key start
LH: loop header
LB: loop body
LE: loop exit
PB: predicated region body
PF: predicated region fallthrough
CT: control target
= control target key end

     0   :  { %12 = vsyncpa [#allocation3], 0  ;;  %s1350_s0 = inlined_call_operand.vmem [shape: bf16[2,8,16], index: 0, kind: input, shape index: {}]   ;;  %s1351_s1 = inlined_call_operand.vmem [shape: bf16[4,16,8], index: 1, kind: input, shape index: {}]   ;;  %s1352_s2 = inlined_call_operand.vmem [shape: bf16[4,16,8], index: 2, kind: input, shape index: {}]   ;;  %s1353_s3 = inlined_call_operand.vmem [shape: bf16[4,16,8], index: 3, kind: input, shape index: {}]   ;;  %s1354_s4 = inlined_call_operand.hbm [shape: bf16[2,4,8,8], index: 4, kind: output, shape index: {0}]   ;;  %s1355_s5 = inlined_call_operand.hbm [shape: bf16[2,4,8,8], index: 5, kind: output, shape index: {1}]   ;;  %s1356_s6 = inlined_call_operand.hbm [shape: bf16[2,4,8,8], index: 6, kind: output, shape index: {2}]  }
   0x1   :  { %14 = vsyncpa [#allocation3 + $0x1], 0 }
   0x2   :  { %15 = vsyncpa [#allocation5], 0 }
   0x3   :  { %17 = vsyncpa [#allocation5 + $0x1], 0  ;;  %s1106_s21 = smov 0   ;;  %s1108_s22 = smov 0  }
   0x4   :  { %s1110_s23 = smov 0   ;;  %s1112_s24 = smov 0  }
   0x5   :  { %s1114_s25 = smov 0   ;;  %s1116_s26 = smov 0  }
   0x6   :  { %s1118_s27 = smov 0   ;;  %s1120_s28 = smov 0  }
   0x7 LB: > { %1363 = sst [smem:[#allocation9_spill]] %s1056_s26  ;;  %s1358_s29 = sadd.s32 4294967295, %s1064_s28   ;;  %s1064_s28 = sphi %s1120_s28, %s23_s28   ;;  %s1060_s27 = sphi %s1118_s27, %s1374_s27   ;;  %s1056_s26 = sphi %s1116_s26, %s1373_s26   ;;  %s1052_s25 = sphi %s1114_s25, %s1372_s25   ;;  %s1048_s24 = sphi %s1112_s24, %s1371_s24   ;;  %s1044_s23 = sphi %s1110_s23, %s1377_s23   ;;  %s1040_s22 = sphi %s1108_s22, %s1376_s22   ;;  %s1036_s21 = sphi %s1106_s21, %s1375_s21  }
   0x8   : > { %1364 = sst [smem:[#allocation10_spill]] %s1060_s27  ;;  %s1357_s30 = sadd.s32 4294967294, %s1064_s28  }
   0x9   : > { %s35_s7 = sadd.s32 1, %s1056_s26  ;;  %s42_s8 = sadd.s32 1, %s1060_s27 }
   0xa   : > { %p36_p0 = scmp.ge.s32.totalorder %s35_s7, 4  ;;  %p169_p1 = scmp.ne.s32.totalorder %s1044_s23, %s1040_s22 }
   0xb   : > { %p170_p2 = scmp.eq.s32.totalorder %s1358_s29, 7  ;;  %p175_p5 = scmp.ne.s32.totalorder %s1040_s22, %s1036_s21 }
   0xc   : > { %s1379_s7 = smov (%p36_p0, %s35_s7), 0  ;;  %s1381_s8 = smov (!%p36_p0, %s42_s8), %s1060_s27 }
   0xd   : > { %1365 = sst [smem:[#allocation11_spill]] %s1379_s7  ;;  %s153_s9 = ssub.s32 %s1056_s26, %s1379_s7 }
   0xe   : > { %p1159_p3 = por %p170_p2, %p169_p1  ;;  %p44_p4 = scmp.ge.s32.totalorder %s1381_s8, 2 }
   0xf   : > { %p176_p6 = scmp.eq.s32.totalorder %s1357_s30, 7  ;;  %p769_p7 = scmp.ge.s32.totalorder %s1064_s28, 1 }
  0x10   : > { %s1383_s8 = smov (%p44_p4, %s1381_s8), 0  ;;  %p288_p9 = scmp.lt.s32.totalorder %s1064_s28, 9 }
  0x11   : > { %1367 = sst [smem:[#allocation12_spill]] %s1383_s8  ;;  %p1170_p8 = por %p176_p6, %p175_p5 }
  0x12   : > { %s152_s12 = ssub.s32 %s1060_s27, %s1383_s8  ;;  %s159_s13 = sadd.s32 1, %s1044_s23 }
  0x13   : > { %s154_s14 = sor.u32 %s153_s9, %s152_s12  ;;  %p289_p10 = pnand %p769_p7, %p288_p9 }
  0x14   : > { %p157_p11 = scmp.eq.s32.totalorder %s154_s14, 0  ;;  %p352_p12 = scmp.lt.s32.totalorder (!%p289_p10), %s1048_s24, 3  ;;  %v1066_v0 = vmov (!%p289_p10), 0.0   ;;  %vm1067_vm0 = vmmov (!%p289_p10), 0   ;;  %vm377_vm1 = vcmask (!%p289_p10), 130048   ;;  %vm422_vm2 = vcmask (!%p289_p10), 60416  }
  0x15   : > { %292 = sbr.rel (%p289_p10) target bundleno = 312 (0x138), region = 36  ;;  %p345_p13 = scmp.lt.s32.totalorder (!%p289_p10), %s1052_s25, 1  ;;  %806 = vmatprep.subr.bf16.mxu0 (!%p289_p10), %v1066_v0  ;;  %808 = vmatprep.mubr.msk.bf16.mxu0 (!%p289_p10), %vm1067_vm0, %v1066_v0 }
  0x16   : > { %s1179_s15 = scalar_select %p157_p11, %s1044_s23, %s159_s13  }
  0x17   : > { %812 = vmatprep.subr.bf16.mxu1 (!%p289_p10), %v1066_v0  ;;  %814 = vmatprep.mubr.msk.bf16.mxu1 (!%p289_p10), %vm1067_vm0, %v1066_v0  ;;  %s328_s29 = sand.u32 (!%p289_p10), 1, %s1040_s22   ;;  %s789_s8 = sshll.u32 (!%p289_p10), %s1052_s25, 2 }
  0x18   : > { %s547_s26 = sadd.s32 (!%p289_p10), %s1048_s24, %s789_s8  ;;  %s525_s8 = scalar_lea.sflag (!%p289_p10), [#allocation3], %s328_s29 }
  0x19   : > { %s1205_s27 = sshll.u32 (!%p289_p10), %s547_s26, 6 }
  0x1c   : > { %s353_s16 = scalar_select %p352_p12, %s1048_s24, 3 }
  0x1d   : > { %s346_s17 = scalar_select %p345_p13, %s1052_s25, 1 }
  0x1e   : > { %s797_s18 = sshll.u32 %s353_s16, 3  ;;  %s1219_s24 = scalar_lea.hbm %s1354_s4, %s1205_s27 }
  0x1f   : > { %s356_s9 = scalar_lea.vmem %s1351_s1, %s797_s18  ;;  %s366_s14 = scalar_lea.vmem %s1353_s3, %s797_s18 }
  0x20   : > { %v907_v1 = vld [vmem:[%s356_s9] sm:$0xff]   ;;  %s773_s30 = sshll.u32 %s346_s17, 2  ;;  %s361_s7 = scalar_lea.vmem %s1352_s2, %s797_s18 }
  0x21   : > { %s351_s16 = scalar_lea.vmem %s1350_s0, %s773_s30  ;;  %v908_v2 = vld [vmem:[%s366_s14] sm:$0xff]   ;;  %807 = vmatpush3.bf16.msra.mxu0 %v907_v1  ;;  %s1202_s17 = sshll.u32 %s328_s29, 2 }
  0x22   : > { %v368_v3 = vld [vmem:[%s351_s16] sm:$0xf]  ;;  %818 = vmatprep.subr.bf16.mxu0 %v1066_v0  ;;  %s330_s30 = scalar_lea.vmem [#allocation2], %s1202_s17  ;;  %s1369_s18 = sadd.s32 4294967295, %s1064_s28  }
  0x23   : > { %v909_v4 = vld [vmem:[%s361_s7] sm:$0xff]   ;;  %s551_s7 = sshll.u32 %s330_s30, 4  ;;  %s1210_s19 = sand.u32 1, %s1369_s18   ;;  %s1221_s7 = int_to_ptr.vmem [resolvable:$true] %s551_s7 }
  0x24   : > { %809 = vmatmul.mubr.msk.bf16.vlgmr.msra.gmra.mrb[0].mxu0 %vm377_vm1, %v368_v3  ;;  %813 = vmatpush3.bf16.msra.mxu1 %v909_v4  ;;  %s337_s20 = scalar_lea.vmem [#allocation4], %s1202_s17  ;;  %s1227_s16 = scalar_lea.hbm %s1355_s5, %s1205_s27 }
  0x25   : > { %819 = vmatpush3.bf16.msra.mxu0 %v908_v2  ;;  %820 = vmatprep.mubr.msk.bf16.mxu0 %vm1067_vm0, %v1066_v0  ;;  %s567_s25 = sshll.u32 %s337_s20, 4  ;;  %s910_s26 = scalar_lea.vmem %s1221_s7, 64  ;;  %s1229_s25 = int_to_ptr.vmem [resolvable:$true] %s567_s25 }
  0x26   : > { %p911_p0 = scmp.ne.s32.totalorder %s1221_s7, %s910_s26  ;;  %s1068_s18 = smov [#allocation2]  }
  0x27   : > { %815 = vmatmul.mubr.msk.bf16.vlgmr.msra.gmra.mrb[0].mxu1 %vm377_vm1, %v368_v3  ;;  %s914_s9 = sshll.u32 %s1068_s18, 4  ;;  %s915_s9 = int_to_ptr.vmem [resolvable:$false] %s914_s9 }
  0x28   : > { %p912_p1 = pnand %p911_p0, %p1159_p3  ;;  %s916_s12 = scalar_lea.vmem %s915_s9, 128 }
  0x29   : > { %p917_p4 = scmp.lt.s32.totalorder %s1221_s7, %s915_s9  ;;  %p918_p5 = scmp.lt.s32.totalorder %s916_s12, %s910_s26 }
  0x2a   : > { %p913_p2 = pneg %p912_p1 }
  0x2b   : > { %p919_p6 = por %p918_p5, %p917_p4 }
  0x2c   : > { %821 = vmatmul.mubr.msk.bf16.vlgmr.msra.gmra.mrb[4].mxu0 %vm377_vm1, %v368_v3 }
  0x2d   : > { %p920_p7 = pnand %p919_p6, %p913_p2 }
  0xf7   : > { %v415_v5 = vpop.f32.mrb[0].mxu0 }
  0xf8   : > { %v421_v6 = vpack.c.bf16 %v415_v5, %v415_v5  ;;  %v810_v7 = vpop.f32.mrb[1].mxu0 }
  0xf9   : > { %v418_v8 = vpop.f32.mrb[2].mxu0 }
  0xfa   : > { %v811_v9 = vpop.f32.mrb[3].mxu0  ;;  %v466_v10 = vpop.f32.mrb[0].mxu1  ;;  %423 = vst.msk [vmem:[%s330_s30] sm:$0xf] %vm422_vm2, %v421_v6 }
  0xfb   : > { %v472_v11 = vpack.c.bf16 %v466_v10, %v466_v10  ;;  %v816_v12 = vpop.f32.mrb[1].mxu1 }
  0xfc   : > { %923 = shalt.err (!%p920_p7)
}
  0xfd   : > { %s924_s29 = scalar_lea.hbm %s1219_s24, 64  ;;  %s928_s14 = scalar_lea.hbm %s1354_s4, 512 }
  0xfe   : > { %p925_p9 = scmp.ne.s32.totalorder %s1219_s24, %s924_s29  ;;  %p929_p12 = scmp.lt.u32.totalorder %s1219_s24, %s1354_s4 }
  0xff   : > { %p930_p13 = scmp.lt.u32.totalorder %s928_s14, %s924_s29  ;;  %p932_p1 = scmp.lt.u32.totalorder %s924_s29, %s1219_s24 }
 0x100   : > { %p926_p10 = pnand %p925_p9, %p1159_p3 }
 0x101   : > { %p931_p0 = por %p930_p13, %p929_p12 }
 0x102   : > { %p927_p11 = pneg %p926_p10 }
 0x103   : > { %p933_p2 = por %p932_p1, %p931_p0 }
 0x105   : > { %p934_p4 = pnand %p933_p2, %p927_p11 }
 0x107   : > { %937 = shalt.err (!%p934_p4)
}
 0x108   : > { %824 = dma.vmem_to_hbm [thread:$0]  (%p1159_p3), %s1221_s7, 64, %s1219_s24, %s525_s8   ;;  %v469_v13 = vpop.f32.mrb[2].mxu1  ;;  %473 = vst.msk [vmem:[%s337_s20] sm:$0xf] %vm422_vm2, %v472_v11 }
 0x109   : > { %v817_v14 = vpop.f32.mrb[3].mxu1  ;;  %s344_s26 = scalar_lea.vmem [#allocation6], %s1202_s17  ;;  %s530_s29 = scalar_lea.sflag [#allocation5], %s1210_s19 }
 0x10a   : > { %s1259_s12 = sshll.u32 %s344_s26, 4  ;;  %s938_s30 = scalar_lea.vmem %s1229_s25, 64  ;;  %s1292_s12 = int_to_ptr.vmem [resolvable:$true] %s1259_s12 }
 0x10b   : > { %p939_p5 = scmp.ne.s32.totalorder %s1229_s25, %s938_s30  ;;  %s1069_s13 = smov [#allocation4]  }
 0x10c   : > { %s942_s14 = sshll.u32 %s1069_s13, 4  ;;  %s943_s14 = int_to_ptr.vmem [resolvable:$false] %s942_s14 }
 0x10d   : > { %p940_p6 = pnand %p939_p5, %p1159_p3  ;;  %s944_s18 = scalar_lea.vmem %s943_s14, 128 }
 0x10e   : > { %p945_p9 = scmp.lt.s32.totalorder %s1229_s25, %s943_s14  ;;  %p946_p10 = scmp.lt.s32.totalorder %s944_s18, %s938_s30 }
 0x10f   : > { %p941_p7 = pneg %p940_p6 }
 0x110   : > { %p947_p11 = por %p946_p10, %p945_p9 }
 0x112   : > { %p948_p12 = pnand %p947_p11, %p941_p7 }
 0x114   : > { %951 = shalt.err (!%p948_p12)
}
 0x115   : > { %s952_s7 = scalar_lea.hbm %s1227_s16, 64  ;;  %s956_s8 = scalar_lea.hbm %s1355_s5, 512 }
 0x116   : > { %p953_p13 = scmp.ne.s32.totalorder %s1227_s16, %s952_s7  ;;  %p957_p2 = scmp.lt.u32.totalorder %s1227_s16, %s1355_s5 }
 0x117   : > { %p958_p4 = scmp.lt.u32.totalorder %s956_s8, %s952_s7  ;;  %p960_p6 = scmp.lt.u32.totalorder %s952_s7, %s1227_s16 }
 0x118   : > { %p954_p0 = pnand %p953_p13, %p1159_p3 }
 0x119   : > { %p959_p5 = por %p958_p4, %p957_p2 }
 0x11a   : > { %p955_p1 = pneg %p954_p0 }
 0x11b   : > { %p961_p7 = por %p960_p6, %p959_p5 }
 0x11d   : > { %p962_p9 = pnand %p961_p7, %p955_p1 }
 0x11f   : > { %965 = shalt.err (!%p962_p9)
}
 0x120   : > { %825 = dma.vmem_to_hbm [thread:$0]  (%p1159_p3), %s1229_s25, 64, %s1227_s16, %s530_s29   ;;  %v516_v15 = vpop.f32.mrb[4].mxu0 }
 0x121   : > { %v522_v16 = vpack.c.bf16 %v516_v15, %v516_v15  ;;  %v822_v17 = vpop.f32.mrb[5].mxu0  ;;  %s1289_s18 = scalar_lea.hbm %s1356_s6, %s1205_s27  ;;  %s966_s7 = scalar_lea.vmem %s1292_s12, 64 }
 0x122   : > { %v519_v18 = vpop.f32.mrb[6].mxu0  ;;  %p967_p10 = scmp.ne.s32.totalorder %s1292_s12, %s966_s7  ;;  %s1070_s25 = smov [#allocation6]  }
 0x123   : > { %523 = vst.msk [vmem:[%s344_s26] sm:$0xf] %vm422_vm2, %v522_v16  ;;  %v823_v19 = vpop.f32.mrb[7].mxu0  ;;  %s970_s16 = sshll.u32 %s1070_s25, 4  ;;  %s971_s16 = int_to_ptr.vmem [resolvable:$false] %s970_s16 }
 0x124   : > { %p968_p11 = pnand %p967_p10, %p1159_p3  ;;  %s972_s27 = scalar_lea.vmem %s971_s16, 128 }
 0x125   : > { %p973_p13 = scmp.lt.s32.totalorder %s1292_s12, %s971_s16  ;;  %p974_p0 = scmp.lt.s32.totalorder %s972_s27, %s966_s7 }
 0x126   : > { %p969_p12 = pneg %p968_p11 }
 0x127   : > { %p975_p1 = por %p974_p0, %p973_p13 }
 0x129   : > { %p976_p2 = pnand %p975_p1, %p969_p12 }
 0x12b   : > { %979 = shalt.err (!%p976_p2)
}
 0x12c   : > { %s980_s17 = scalar_lea.hbm %s1289_s18, 64  ;;  %s984_s24 = scalar_lea.hbm %s1356_s6, 512 }
 0x12d   : > { %p981_p4 = scmp.ne.s32.totalorder %s1289_s18, %s980_s17  ;;  %p985_p7 = scmp.lt.u32.totalorder %s1289_s18, %s1356_s6 }
 0x12e   : > { %p986_p9 = scmp.lt.u32.totalorder %s984_s24, %s980_s17  ;;  %p988_p11 = scmp.lt.u32.totalorder %s980_s17, %s1289_s18 }
 0x12f   : > { %p982_p5 = pnand %p981_p4, %p1159_p3 }
 0x130   : > { %p987_p10 = por %p986_p9, %p985_p7 }
 0x131   : > { %p983_p6 = pneg %p982_p5 }
 0x132   : > { %p989_p12 = por %p988_p11, %p987_p10 }
 0x134   : > { %p990_p13 = pnand %p989_p12, %p983_p6 }
 0x136   : > { %993 = shalt.err (!%p990_p13)
}
 0x137   : > { %826 = dma.vmem_to_hbm [thread:$0]  (%p1159_p3), %s1292_s12, 64, %s1289_s18, %s530_s29  }
 0x138 PF: > { %p840_p0 = scmp.ge.s32.totalorder %s1064_s28, 2  ;;  %s595_s13 = sand.u32 1, %s1036_s21  }
 0x139   : > { %s596_s30 = scalar_lea.sflag [#allocation3], %s595_s13 }
 0x13a   : > { %p831_p1 = pnand %p840_p0, %p1170_p8 }
 0x13c   : > { %1027 = dma.done.wait (!%p831_p1), %s596_s30, 64  }
 0x13d   : > { %1029 = vsyncadd (!%p831_p1), %s596_s30, 4294967232  ;;  %s1370_s14 = sadd.s32 4294967294, %s1064_s28  }
 0x13e   : > { %s604_s7 = sand.u32 1, %s1370_s14  }
 0x13f   : > { %s605_s10 = scalar_lea.sflag [#allocation5], %s604_s7 }
 0x140   : > { %1031 = dma.done.wait (!%p831_p1), %s605_s10, 128  }
 0x141   : > { %1033 = vsyncadd (!%p831_p1), %s605_s10, 4294967168  ;;  %s23_s28 = sadd.s32 1, %s1064_s28   ;;  %s1371_s24 = sld [smem:[#allocation9_spill]] }
 0x142   : > { %p20_p3 = scmp.ge.s32.totalorder %s23_s28, 10   ;;  %s1372_s25 = sld [smem:[#allocation10_spill]] }
 0x143   : > { %s1373_s26 = sld [smem:[#allocation11_spill]]  ;;  %s1374_s27 = sld [smem:[#allocation12_spill]] }
 0x144   : > { %s1375_s21 = smov %s1040_s22  ;;  %s1376_s22 = smov %s1044_s23 }
 0x145   : > { %s1377_s23 = smov %s1179_s15  ;;  %22 = sbr.rel (!%p20_p3) target bundleno = 7 (0x7), region = 112 }
 0x14c   :  { %619 = vsyncpa [#allocation3], 1 }
 0x14d   :  { %621 = vsyncpa [#allocation3 + $0x1], 1 }
 0x14e   :  { %622 = vsyncpa [#allocation5], 1 }
 0x14f   :  { %624 = vsyncpa [#allocation5 + $0x1], 1 }

</bundles_post_ra>
